<compile_context>
chip_gen: v7x
topology: tpu7x:2x2x1
jax: 0.10.0
libtpu: 0.0.40
codegen_flags: <defaults>
</compile_context>

<pallas_src>
import functools
import math

import jax
import jax.numpy as jnp
from jax.experimental import pallas as pl
from jax.experimental.pallas import tpu as pltpu

_LANES = 128


def _cdiv(a, b):
    return -(-a // b)


def _round_up(a, b):
    return _cdiv(a, b) * b


def _core_split_config():
    """(num_core_splits, leading grid-axis semantics) for the current chip."""
    try:
        kind = jax.devices()[0].device_kind.lower()
    except Exception:
        return 1, "arbitrary"
    if "v7" in kind:
        # 2 TensorCores per chip: only CORE_PARALLEL guarantees the 2-TC split.
        return 2, getattr(pltpu, "CORE_PARALLEL", "parallel")
    if "v4" in kind or "v5p" in kind:
        # Megacore: "parallel" shards the leading axis across the two cores.
        return 2, "parallel"
    # v5e / v6e: single TensorCore -- an extra grid axis is pure overhead.
    return 1, "arbitrary"


def _focal_loss_kernel(x_ref, t_ref, out_ref, acc_ref, *, gamma, int_gamma,
                       row_tile, steps_per_core, full_rows, rem_lanes):
    c = pl.program_id(0)   # core split
    i = pl.program_id(1)   # sequential reduction step

    # Zero the single-vreg accumulator at the start of each core's sweep.
    @pl.when(i == 0)
    def _():
        acc_ref[...] = jnp.zeros_like(acc_ref)

    x = x_ref[...].astype(jnp.float32)
    t = t_ref[...].astype(jnp.float32)

    # Shared transcendentals.  NOTE: reuse below relies on binary {0,1}
    # targets so that |x*(2t-1)| == |x|.
    u = jnp.exp(-jnp.abs(x))          # EUP
    lp = jnp.log1p(u)                 # EUP

    xt = x * t
    # BCE-with-logits (stable): max(x,0) - x*t + log1p(exp(-|x|))
    bce = jnp.maximum(x, 0.0) - xt + lp
    # z = -x*(2t-1) reusing xt
    z = x - 2.0 * xt

    if int_gamma is not None:
        # exp(gamma * logsigmoid(z)) == sigmoid(z)**gamma
        #   sigmoid(z) = where(z<0, u, 1) / (1+u)   with u = exp(-|z|) = exp(-|x|)
        if int_gamma == 0:
            loss = bce
        else:
            base = jnp.where(z < 0.0, u, 1.0) / (1.0 + u)
            factor = base
            for _ in range(int_gamma - 1):
                factor = factor * base
            loss = factor * bce
    else:
        # General gamma: invprobs = logsigmoid(z) = min(z,0) - log1p(exp(-|z|))
        invprobs = jnp.minimum(z, 0.0) - lp
        loss = jnp.exp(invprobs * gamma) * bce

    base_row = (c * steps_per_core + i) * row_tile
    # Only the block touching rows >= full_rows (padded / out-of-range rows)
    # needs masking; interior blocks take the plain path.
    needs_mask = base_row + row_tile > full_rows

    @pl.when(needs_mask)
    def _():
        grow = base_row + jax.lax.broadcasted_iota(jnp.int32, loss.shape, 0)
        lane = jax.lax.broadcasted_iota(jnp.int32, loss.shape, 1)
        valid = (grow < full_rows) | ((grow == full_rows) & (lane < rem_lanes))
        masked = jnp.where(valid, loss, 0.0)
        acc_ref[...] += masked.reshape(-1, 8, _LANES).sum(axis=0)

    @pl.when(jnp.logical_not(needs_mask))
    def _():
        acc_ref[...] += loss.reshape(-1, 8, _LANES).sum(axis=0)

    # Single cross-lane reduction + SMEM scalar write per core.
    @pl.when(i == pl.num_programs(1) - 1)
    def _():
        out_ref[0, 0] = jnp.sum(acc_ref[...])


def focal_loss(input_arr, target_arr, gamma, *, max_row_tile=4096):
    if input_arr.shape != target_arr.shape:
        raise ValueError(
            "Target size ({}) must be the same as input size ({})".format(
                target_arr.shape, input_arr.shape
            )
        )

    total = int(math.prod(input_arr.shape))
    rows = _cdiv(total, _LANES)

    x_flat = jnp.ravel(input_arr).astype(jnp.float32)   # no-op for f32 input
    t_flat = jnp.ravel(target_arr)                       # native dtype, no cast pass
    t_bytes = jnp.dtype(t_flat.dtype).itemsize
    row_mult = {1: 32, 2: 16}.get(t_bytes, 8)            # sublane packing granule

    # Minimal pad only: to a full (row_mult, 128) granule.  Zero for typical
    # aligned shapes; otherwise a few KB (still one copy, unavoidable here).
    padded_rows = _round_up(rows, row_mult)
    padded_total = padded_rows * _LANES
    pad = padded_total - total
    if pad:
        x_flat = jnp.pad(x_flat, (0, pad))
        t_flat = jnp.pad(t_flat, (0, pad))
    x2 = x_flat.reshape(padded_rows, _LANES)
    t2 = t_flat.reshape(padded_rows, _LANES)

    row_tile = min(_round_up(max_row_tile, row_mult), padded_rows)
    blocks_total = _cdiv(padded_rows, row_tile)

    splits, lead_sem = _core_split_config()
    splits = min(splits, blocks_total)
    if splits == 1:
        lead_sem = "arbitrary"
    steps_per_core = _cdiv(blocks_total, splits)

    g = float(gamma)
    int_gamma = int(g) if (g.is_integer() and 0.0 <= g <= 8.0) else None

    kernel = functools.partial(
        _focal_loss_kernel,
        gamma=g,
        int_gamma=int_gamma,
        row_tile=row_tile,
        steps_per_core=steps_per_core,
        full_rows=total // _LANES,
        rem_lanes=total % _LANES,
    )

    # Clamp the block index so the extra (duplicate) block of an uneven core
    # split never DMAs out of bounds; its contribution is fully masked.
    def block_index(c, i):
        return (jnp.minimum(c * steps_per_core + i, blocks_total - 1), 0)

    cost = pl.CostEstimate(
        flops=18 * padded_total,
        transcendentals=(2 if int_gamma is not None else 3) * padded_total,
        bytes_accessed=(4 + t_bytes) * padded_total + 4 * splits,
    )

    partial_sums = pl.pallas_call(
        kernel,
        out_shape=jax.ShapeDtypeStruct((splits, 1), jnp.float32),
        grid_spec=pltpu.PrefetchScalarGridSpec(
            num_scalar_prefetch=0,
            grid=(splits, steps_per_core),
            in_specs=[
                pl.BlockSpec((row_tile, _LANES), block_index),
                pl.BlockSpec((row_tile, _LANES), block_index),
            ],
            out_specs=pl.BlockSpec(
                (1, 1), lambda c, i: (c, 0), memory_space=pltpu.SMEM
            ),
            scratch_shapes=[pltpu.VMEM((8, _LANES), jnp.float32)],
        ),
        compiler_params=pltpu.CompilerParams(
            dimension_semantics=(lead_sem, "arbitrary"),
            vmem_limit_bytes=32 * 1024 * 1024,
        ),
        cost_estimate=cost,
    )(x2, t2)

    return (jnp.sum(partial_sums) / total).astype(jnp.float32)


def focal_loss_ref(input_arr, target_arr, gamma):
    x = input_arr.astype(jnp.float32)
    t = target_arr.astype(jnp.float32)
    max_val = jnp.maximum(-x, 0.0)
    loss = x - x * t + max_val + jnp.log(jnp.exp(-max_val) + jnp.exp(-x - max_val))
    invprobs = jax.nn.log_sigmoid(-x * (t * 2.0 - 1.0))
    loss = jnp.exp(invprobs * gamma) * loss
    return jnp.mean(loss)


if __name__ == "__main__":
    gamma = 2.0  # deterministic module "parameter"
    key = jax.random.PRNGKey(0)
    k1, k2 = jax.random.split(key)

    # NCHW logits and binary targets of the same shape (B=2, C=4, H=W=16).
    x = jax.random.normal(k1, (2, 4, 16, 16), dtype=jnp.float32)
    tgt = jax.random.bernoulli(k2, p=0.5, shape=(2, 4, 16, 16)).astype(jnp.float32)

    out = jax.block_until_ready(focal_loss(x, tgt, gamma))
    ref = jax.block_until_ready(focal_loss_ref(x, tgt, gamma))

    assert jnp.allclose(out, ref, rtol=1e-5, atol=1e-6), (out, ref)
    print("KERNEL_OK")
</pallas_src>

<mosaic_0001>
module attributes {stable_mosaic.version = 11 : i64} {
  func.func @_focal_loss_kernel(%arg0: i32, %arg1: i32, %arg2: memref<16x128xf32, #tpu.memory_space<vmem>>, %arg3: memref<16x128xf32, #tpu.memory_space<vmem>>, %arg4: memref<1x1xf32, #tpu.memory_space<smem>>, %arg5: memref<8x128xf32, #tpu.memory_space<vmem>>) attributes {dimension_semantics = [#tpu.dimension_semantics<arbitrary>, #tpu.dimension_semantics<arbitrary>], iteration_bounds = array<i64: 1, 1>, scalar_prefetch = 0 : i64, scratch_operands = 1 : i64, tpu.core_type = #tpu.core_type<tc>, window_params = [{transform_indices = @transform_0, window_bounds = array<i64: 16, 128>}, {transform_indices = @transform_1, window_bounds = array<i64: 16, 128>}, {transform_indices = @transform_2, window_bounds = array<i64: 1, 1>}]} {
    %c0_i32 = arith.constant 0 : i32
    %0 = arith.cmpi eq, %arg1, %c0_i32 : i32
    %1 = arith.extui %0 : i1 to i32
    %c0_i32_0 = arith.constant 0 : i32
    %2 = arith.cmpi ne, %1, %c0_i32_0 : i32
    scf.if %2 {
      %cst_15 = arith.constant 0.000000e+00 : f32
      %40 = vector.broadcast %cst_15 : f32 to vector<8x128xf32>
      %c0_16 = arith.constant 0 : index
      %c0_17 = arith.constant 0 : index
      %41 = vector.load %arg5[%c0_16, %c0_17] : memref<8x128xf32, #tpu.memory_space<vmem>>, vector<8x128xf32>
      tpu.vector_store %arg5[%c0_16, %c0_17], %40 {strides = array<i32>} : memref<8x128xf32, #tpu.memory_space<vmem>>, vector<8x128xf32>,
    } else {
    }
    %c0 = arith.constant 0 : index
    %c0_1 = arith.constant 0 : index
    %3 = vector.load %arg2[%c0, %c0_1] : memref<16x128xf32, #tpu.memory_space<vmem>>, vector<16x128xf32>
    %c0_2 = arith.constant 0 : index
    %c0_3 = arith.constant 0 : index
    %4 = vector.load %arg3[%c0_2, %c0_3] : memref<16x128xf32, #tpu.memory_space<vmem>>, vector<16x128xf32>
    %5 = math.absf %3 : vector<16x128xf32>
    %cst = arith.constant 0.000000e+00 : f32
    %6 = vector.broadcast %cst : f32 to vector<16x128xf32>
    %7 = arith.subf %6, %5 : vector<16x128xf32>
    %8 = math.exp %7 : vector<16x128xf32>
    %9 = math.log1p %8 : vector<16x128xf32>
    %10 = arith.mulf %3, %4 : vector<16x128xf32>
    %cst_4 = arith.constant 0.000000e+00 : f32
    %11 = vector.broadcast %cst_4 : f32 to vector<16x128xf32>
    %12 = arith.maximumf %3, %11 : vector<16x128xf32>
    %13 = arith.subf %12, %10 : vector<16x128xf32>
    %14 = arith.addf %13, %9 : vector<16x128xf32>
    %cst_5 = arith.constant 2.000000e+00 : f32
    %15 = vector.broadcast %cst_5 : f32 to vector<16x128xf32>
    %16 = arith.mulf %15, %10 : vector<16x128xf32>
    %17 = arith.subf %3, %16 : vector<16x128xf32>
    %cst_6 = arith.constant 0.000000e+00 : f32
    %18 = vector.broadcast %cst_6 : f32 to vector<16x128xf32>
    %19 = arith.cmpf olt, %17, %18 : vector<16x128xf32>
    %cst_7 = arith.constant 1.000000e+00 : f32
    %20 = vector.broadcast %cst_7 : f32 to vector<16x128xf32>
    %21 = arith.select %19, %8, %20 : vector<16x128xi1>, vector<16x128xf32>
    %cst_8 = arith.constant 1.000000e+00 : f32
    %22 = vector.broadcast %cst_8 : f32 to vector<16x128xf32>
    %23 = arith.addf %22, %8 : vector<16x128xf32>
    %24 = arith.divf %21, %23 : vector<16x128xf32>
    %25 = arith.mulf %24, %24 : vector<16x128xf32>
    %26 = arith.mulf %25, %14 : vector<16x128xf32>
    %c1_i32 = arith.constant 1 : i32
    %27 = arith.muli %arg0, %c1_i32 : i32
    %28 = arith.addi %27, %arg1 : i32
    %c16_i32 = arith.constant 16 : i32
    %29 = arith.muli %28, %c16_i32 : i32
    %c16_i32_9 = arith.constant 16 : i32
    %30 = arith.addi %29, %c16_i32_9 : i32
    %c16_i32_10 = arith.constant 16 : i32
    %31 = arith.cmpi sgt, %30, %c16_i32_10 : i32
    %32 = arith.extui %31 : i1 to i32
    %c0_i32_11 = arith.constant 0 : i32
    %33 = arith.cmpi ne, %32, %c0_i32_11 : i32
    scf.if %33 {
      %40 = tpu.iota {dimensions = array<i32: 0>} : vector<16x128xi32>
      %41 = vector.broadcast %29 : i32 to vector<16x128xi32>
      %42 = arith.addi %41, %40 : vector<16x128xi32>
      %43 = tpu.iota {dimensions = array<i32: 1>} : vector<16x128xi32>
      %c16_i32_15 = arith.constant 16 : i32
      %44 = vector.broadcast %c16_i32_15 : i32 to vector<16x128xi32>
      %45 = arith.cmpi slt, %42, %44 : vector<16x128xi32>
      %c16_i32_16 = arith.constant 16 : i32
      %46 = vector.broadcast %c16_i32_16 : i32 to vector<16x128xi32>
      %47 = arith.cmpi eq, %42, %46 : vector<16x128xi32>
      %c0_i32_17 = arith.constant 0 : i32
      %48 = vector.broadcast %c0_i32_17 : i32 to vector<16x128xi32>
      %49 = arith.cmpi slt, %43, %48 : vector<16x128xi32>
      %50 = arith.andi %47, %49 : vector<16x128xi1>
      %51 = arith.ori %45, %50 : vector<16x128xi1>
      %cst_18 = arith.constant 0.000000e+00 : f32
      %52 = vector.broadcast %cst_18 : f32 to vector<16x128xf32>
      %53 = arith.select %51, %26, %52 : vector<16x128xi1>, vector<16x128xf32>
      %c0_19 = arith.constant 0 : index
      %c0_20 = arith.constant 0 : index
      %54 = vector.load %arg5[%c0_19, %c0_20] : memref<8x128xf32, #tpu.memory_space<vmem>>, vector<8x128xf32>
      %55 = vector.shape_cast %53 : vector<16x128xf32> to vector<2x8x128xf32>
      %cst_21 = arith.constant dense<0.000000e+00> : vector<8x128xf32>
      %56 = vector.multi_reduction <add>, %55, %cst_21 [0] : vector<2x8x128xf32> to vector<8x128xf32>
      %57 = arith.addf %54, %56 : vector<8x128xf32>
      %c0_22 = arith.constant 0 : index
      %c0_23 = arith.constant 0 : index
      %58 = vector.load %arg5[%c0_22, %c0_23] : memref<8x128xf32, #tpu.memory_space<vmem>>, vector<8x128xf32>
      tpu.vector_store %arg5[%c0_22, %c0_23], %57 {strides = array<i32>} : memref<8x128xf32, #tpu.memory_space<vmem>>, vector<8x128xf32>,
    } else {
    }
    %true = arith.constant true
    %34 = arith.xori %31, %true : i1
    %35 = arith.extui %34 : i1 to i32
    %c0_i32_12 = arith.constant 0 : i32
    %36 = arith.cmpi ne, %35, %c0_i32_12 : i32
    scf.if %36 {
      %c0_15 = arith.constant 0 : index
      %c0_16 = arith.constant 0 : index
      %40 = vector.load %arg5[%c0_15, %c0_16] : memref<8x128xf32, #tpu.memory_space<vmem>>, vector<8x128xf32>
      %41 = vector.shape_cast %26 : vector<16x128xf32> to vector<2x8x128xf32>
      %cst_17 = arith.constant dense<0.000000e+00> : vector<8x128xf32>
      %42 = vector.multi_reduction <add>, %41, %cst_17 [0] : vector<2x8x128xf32> to vector<8x128xf32>
      %43 = arith.addf %40, %42 : vector<8x128xf32>
      %c0_18 = arith.constant 0 : index
      %c0_19 = arith.constant 0 : index
      %44 = vector.load %arg5[%c0_18, %c0_19] : memref<8x128xf32, #tpu.memory_space<vmem>>, vector<8x128xf32>
      tpu.vector_store %arg5[%c0_18, %c0_19], %43 {strides = array<i32>} : memref<8x128xf32, #tpu.memory_space<vmem>>, vector<8x128xf32>,
    } else {
    }
    %c0_i32_13 = arith.constant 0 : i32
    %37 = arith.cmpi eq, %arg1, %c0_i32_13 : i32
    %38 = arith.extui %37 : i1 to i32
    %c0_i32_14 = arith.constant 0 : i32
    %39 = arith.cmpi ne, %38, %c0_i32_14 : i32
    scf.if %39 {
      %c0_15 = arith.constant 0 : index
      %c0_16 = arith.constant 0 : index
      %40 = vector.load %arg5[%c0_15, %c0_16] : memref<8x128xf32, #tpu.memory_space<vmem>>, vector<8x128xf32>
      %41 = vector.shape_cast %40 : vector<8x128xf32> to vector<1x8x128xf32>
      %cst_17 = arith.constant dense<0.000000e+00> : vector<1xf32>
      %42 = vector.multi_reduction <add>, %41, %cst_17 [1, 2] : vector<1x8x128xf32> to vector<1xf32>
      %43 = vector.shape_cast %42 : vector<1xf32> to vector<1x1x1xf32>
      %44 = vector.extract %43[0, 0, 0] : f32 from vector<1x1x1xf32>
      %c0_18 = arith.constant 0 : index
      %c0_19 = arith.constant 0 : index
      %45 = memref.load %arg4[%c0_18, %c0_19] : memref<1x1xf32, #tpu.memory_space<smem>>
      memref.store %44, %arg4[%c0_18, %c0_19] : memref<1x1xf32, #tpu.memory_space<smem>>
    } else {
    }
    return
  }
  func.func @transform_0(%arg0: i32, %arg1: i32) -> (i32, i32) {
    %c1_i32 = arith.constant 1 : i32
    %0 = arith.muli %arg0, %c1_i32 : i32
    %1 = arith.addi %0, %arg1 : i32
    %c0_i32 = arith.constant 0 : i32
    %2 = arith.minsi %1, %c0_i32 : i32
    %c0_i32_0 = arith.constant 0 : i32
    %c0_i32_1 = arith.constant 0 : i32
    return %2, %c0_i32_0 : i32, i32
  }
  func.func @transform_1(%arg0: i32, %arg1: i32) -> (i32, i32) {
    %c1_i32 = arith.constant 1 : i32
    %0 = arith.muli %arg0, %c1_i32 : i32
    %1 = arith.addi %0, %arg1 : i32
    %c0_i32 = arith.constant 0 : i32
    %2 = arith.minsi %1, %c0_i32 : i32
    %c0_i32_0 = arith.constant 0 : i32
    %c0_i32_1 = arith.constant 0 : i32
    return %2, %c0_i32_0 : i32, i32
  }
  func.func @transform_2(%arg0: i32, %arg1: i32) -> (i32, i32) {
    %c0_i32 = arith.constant 0 : i32
    %c0_i32_0 = arith.constant 0 : i32
    return %arg0, %c0_i32 : i32, i32
  }
}

</mosaic_0001>

<bundles_post_ra>
// kernel: tpu_custom_call.1
= control target key start
LH: loop header
LB: loop body
LE: loop exit
PB: predicated region body
PF: predicated region fallthrough
CT: control target
= control target key end

     0   :  { %7 = vsyncpa [#allocation4], 0  ;;  %s340_s0 = inlined_call_operand.hbm [shape: f32[16,128], index: 0, kind: input, shape index: {}]   ;;  %s341_s1 = inlined_call_operand.hbm [shape: f32[16,128], index: 1, kind: input, shape index: {}]   ;;  %s342_s2 = inlined_call_operand.hbm [shape: f32[1,1], index: 2, kind: output, shape index: {}]  }
   0x1   :  { %8 = vsyncpa [#allocation7], 0 }
   0x2   :  { %9 = vsyncpa [#allocation5], 0  ;;  %s272_s9 = smov [#allocation3]   ;;  %s212_s13 = scalar_lea.hbm %s340_s0, 256 }
   0x3   :  { %s21_s10 = sshll.u32 %s272_s9, 4  ;;  %p213_p0 = scmp.ne.s32.totalorder %s340_s0, %s212_s13  ;;  %s22_s10 = int_to_ptr.vmem [resolvable:$true] %s21_s10 }
   0x4   :  { %p216_p1 = scmp.lt.u32.totalorder %s212_s13, %s340_s0 }
   0x6   :  { %p218_p2 = pnand %p216_p1, %p213_p0 }
   0x8   :  { %221 = shalt.err (!%p218_p2)
}
   0x9   :  { %s222_s18 = scalar_lea.vmem %s22_s10, 256  ;;  %p227_p4 = scmp.lt.s32.totalorder %s22_s10, %s22_s10 }
   0xa   :  { %p223_p3 = scmp.ne.s32.totalorder %s22_s10, %s222_s18  ;;  %p228_p5 = scmp.lt.s32.totalorder %s222_s18, %s222_s18 }
   0xc   :  { %p229_p6 = por %p228_p5, %p227_p4 }
   0xe   :  { %p230_p7 = pnand %p229_p6, %p223_p3 }
  0x10   :  { %233 = shalt.err (!%p230_p7)
}
  0x11   :  { %s273_s19 = smov 128   ;;  %s274_s20 = smov 8  }
  0x12   :  { %27 = dma.hbm_to_vmem [thread:$0]  %s340_s0, 256, %s22_s10, [#allocation4], %s273_s19, %s273_s19, %s274_s20  }
  0x13   :  { %s275_s23 = smov [#allocation6]   ;;  %s234_s27 = scalar_lea.hbm %s341_s1, 256 }
  0x14   :  { %s39_s24 = sshll.u32 %s275_s23, 4  ;;  %p235_p8 = scmp.ne.s32.totalorder %s341_s1, %s234_s27  ;;  %s40_s24 = int_to_ptr.vmem [resolvable:$true] %s39_s24 }
  0x15   :  { %p238_p9 = scmp.lt.u32.totalorder %s234_s27, %s341_s1 }
  0x17   :  { %p240_p10 = pnand %p238_p9, %p235_p8 }
  0x19   :  { %243 = shalt.err (!%p240_p10)
}
  0x1a   :  { %s244_s4 = scalar_lea.vmem %s40_s24, 256  ;;  %p249_p12 = scmp.lt.s32.totalorder %s40_s24, %s40_s24 }
  0x1b   :  { %p245_p11 = scmp.ne.s32.totalorder %s40_s24, %s244_s4  ;;  %p250_p13 = scmp.lt.s32.totalorder %s244_s4, %s244_s4 }
  0x1d   :  { %p251_p0 = por %p250_p13, %p249_p12 }
  0x1f   :  { %p252_p1 = pnand %p251_p0, %p245_p11 }
  0x21   :  { %255 = shalt.err (!%p252_p1)
}
  0x22   :  { %45 = dma.hbm_to_vmem [thread:$0]  %s341_s1, 256, %s40_s24, [#allocation7], %s273_s19, %s273_s19, %s274_s20  }
  0x23   :  { %266 = dma.done.wait [#allocation4], 256  }
  0x24   :  { %267 = vsyncadd [#allocation4], 4294967040 }
  0x25   :  { %268 = dma.done.wait [#allocation7], 256  }
  0x26   :  { %269 = vsyncadd [#allocation7], 4294967040  ;;  %v65_v0 = vld [vmem:[#allocation3] sm:$0xff]  ;;  %v66_v1 = vld [vmem:[#allocation3 + $0x8] sm:$0xff]  ;;  %s256_s8 = scalar_lea.hbm %s342_s2, 16 }
  0x27   :  { %v69_v2 = vand.u32 2147483647, %v65_v0  ;;  %v70_v3 = vand.u32 2147483647, %v66_v1  ;;  %v67_v8 = vld [vmem:[#allocation6] sm:$0xff]  ;;  %v68_v9 = vld [vmem:[#allocation6 + $0x8] sm:$0xff]  ;;  %p257_p2 = scmp.ne.s32.totalorder %s342_s2, %s256_s8  ;;  %p260_p3 = scmp.lt.u32.totalorder %s256_s8, %s342_s2 }
  0x28   :  { %v95_v10 = vmul.f32 %v67_v8, %v65_v0  ;;  %v96_v11 = vmul.f32 %v68_v9, %v66_v1  ;;  %v97_v25 = vmax.f32 %v65_v0, 0.0  ;;  %v98_v27 = vmax.f32 %v66_v1, 0.0 }
  0x29   :  { %v71_v4 = vsub.f32 0.0, %v69_v2  ;;  %v72_v5 = vsub.f32 0.0, %v70_v3  ;;  %p262_p4 = pnand %p260_p3, %p257_p2 }
  0x2a   :  { %v103_v16 = vmul.f32 2.0, %v95_v10  ;;  %v104_v17 = vmul.f32 2.0, %v96_v11  ;;  %v99_v33 = vsub.f32 %v97_v25, %v95_v10  ;;  %v100_v37 = vsub.f32 %v98_v27, %v96_v11 }
  0x2b   :  { %v73_v6 = vmul.f32 1.442695, %v71_v4  ;;  %v75_v7 = vmul.f32 1.442695, %v72_v5 }
  0x2c   :  { %v105_v20 = vsub.f32 %v65_v0, %v103_v16  ;;  %v106_v21 = vsub.f32 %v66_v1, %v104_v17 }
  0x2d   :  { %200 = vpow2.f32 %v73_v6 }
  0x2e   :  { %202 = vpow2.f32 %v75_v7  ;;  %vm316_vm0 = vcmp.lt.f32.partialorder %v105_v20, 0.0  ;;  %vm320_vm1 = vcmp.lt.f32.partialorder %v106_v21, 0.0 }
  0x37   :  { %v201_v12 = vpop.eup %200 }
  0x38   :  { %v203_v13 = vpop.eup %202  ;;  %v77_v14 = vadd.f32 1.0, %v201_v12  ;;  %v80_v18 = vmul.f32 -0.5, %v201_v12  ;;  %v83_v23 = vand.u32 2147483647, %v201_v12  ;;  %v109_v34 = vsel %vm316_vm0, %v201_v12, 1.0 }
  0x39   :  { %v86_v15 = vadd.f32 1.0, %v203_v13  ;;  %v89_v19 = vmul.f32 -0.5, %v203_v13  ;;  %v92_v26 = vand.u32 2147483647, %v203_v13  ;;  %v110_v38 = vsel %vm320_vm1, %v203_v13, 1.0 }
  0x3a   :  { %204 = vlog2.f32 %v77_v14  ;;  %v81_v22 = vadd.f32 1.0, %v80_v18  ;;  %vm84_vm2 = vcmp.lt.f32.partialorder %v83_v23, 0.0004427343 }
  0x3b   :  { %206 = vlog2.f32 %v86_v15  ;;  %v90_v24 = vadd.f32 1.0, %v89_v19  ;;  %vm93_vm3 = vcmp.lt.f32.partialorder %v92_v26, 0.0004427343 }
  0x3c   :  { %208 = vrcp.f32 %v77_v14  ;;  %v82_v30 = vmul.f32 %v201_v12, %v81_v22 }
  0x3d   :  { %210 = vrcp.f32 %v86_v15  ;;  %v91_v32 = vmul.f32 %v203_v13, %v90_v24 }
  0x44   :  { %v205_v31 = vpop.eup %204 }
  0x45   :  { %v207_v35 = vpop.eup %206  ;;  %v79_v36 = vmul.f32 0.6931472, %v205_v31 }
  0x46   :  { %v209_v39 = vpop.eup %208  ;;  %v88_v40 = vmul.f32 0.6931472, %v207_v35 }
  0x47   :  { %v211_v41 = vpop.eup %210  ;;  %v85_v42 = vsel %vm84_vm2, %v82_v30, %v79_v36  ;;  %v114_v43 = vmul.f32 %v209_v39, %v109_v34 }
  0x48   :  { %v94_v44 = vsel %vm93_vm3, %v91_v32, %v88_v40  ;;  %v101_v45 = vadd.f32 %v99_v33, %v85_v42  ;;  %v116_v46 = vmul.f32 %v211_v41, %v110_v38 }
  0x49   :  { %v102_v47 = vadd.f32 %v100_v37, %v94_v44  ;;  %v117_v48 = vmul.f32 %v114_v43, %v114_v43 }
  0x4a   :  { %v118_v49 = vmul.f32 %v116_v46, %v116_v46 }
  0x4b   :  { %v119_v50 = vmul.f32 %v117_v48, %v101_v45 }
  0x4c   :  { %v120_v51 = vmul.f32 %v118_v49, %v102_v47 }
  0x4e   :  { %v156_v52 = vadd.f32 %v120_v51, %v119_v50 }
  0x50   :  { %163 = vadd.xlane.f32.xlu0 %v156_v52 }
  0xdd   :  { %v164_v53 = vpop.xlane.xlu0 %163 }
  0xde   :  { %v165_v54 = vrot.slane %v164_v53, 4 }
  0xe0   :  { %v166_v55 = vadd.f32 %v165_v54, %v164_v53 }
  0xe2   :  { %v167_v56 = vrot.slane %v166_v55, 2 }
  0xe4   :  { %v168_v57 = vadd.f32 %v167_v56, %v166_v55 }
  0xe6   :  { %v169_v58 = vrot.slane %v168_v57, 1 }
  0xe8   :  { %v170_v59 = vadd.f32 %v169_v58, %v168_v57 }
  0xea   :  { %193 = vpush %v170_v59 }
 0x11b   :  { %s194_s1 = spop %193 }
 0x11c   :  { %173 = sst [smem:[#allocation8]] %s194_s1 }
 0x11d   :  { %265 = shalt.err (!%p262_p4)
}
 0x11e   :  { %s276_s13 = smov [#allocation8]  }
 0x11f   :  { %181 = dma.smem_to_hbm %s276_s13, 16, %s342_s2, [#allocation5]  }
 0x120   :  { %270 = dma.done.wait [#allocation5], 16  }
 0x121   :  { %271 = vsyncadd [#allocation5], 4294967280 }
 0x122   :  { %185 = sfence }
 0x123   :  { %186 = vsyncpa [#allocation4], 1 }
 0x124   :  { %187 = vsyncpa [#allocation7], 1 }
 0x125   :  { %188 = vsyncpa [#allocation5], 1 }

</bundles_post_ra>
